<compile_context>
chip_gen: v5e
topology: v5e:2x2
jax: 0.10.0
libtpu: 0.0.40
codegen_flags: <defaults>
</compile_context>

<pallas_src>
import jax
import jax.numpy as jnp
from jax.experimental import pallas as pl
from jax.experimental.pallas import tpu as pltpu


def node_to_atom_kernel(x_ref, res_ref, idx_ref, w_ref, out_ref, y_ref):
    # x_ref:   (1, tA, D)    atom features (residual input), native dtype
    # res_ref: (1, R,  D)    residue features for this batch (DMA'd once/batch)
    # idx_ref: (1, 1, 1, tA) int32 residue index per atom; -1 marks padded atoms
    # w_ref:   (D, D)        pre-transposed Linear weight (in, out), resident
    # out_ref: (1, tA, D)
    # y_ref:   (R, D) f32 VMEM scratch -- per-batch projected residues
    tA = x_ref.shape[1]
    R = res_ref.shape[1]

    # Per-batch hoist: Y = ReLU(res @ W.T), computed once per batch (at atom
    # tile 0) and reused by every atom tile of that batch.  Mixed-dtype inputs
    # promote; accumulation is f32.  Exact vs. the reference because ReLU and
    # the row-gather commute (no bias term).
    @pl.when(pl.program_id(1) == 0)
    def _():
        y = jnp.dot(res_ref[0], w_ref[...],
                    preferred_element_type=jnp.float32)            # (R, D) f32
        y_ref[...] = jnp.maximum(y, 0.0)

    # One-hot gather of the projected rows on the MXU.  Padded atoms carry
    # index -1 -> all-zero one-hot row, applying the pad mask for free.
    # One-hot entries are exactly 0/1, so the selection matmul is exact in f32.
    idx = idx_ref[0, 0, 0]                                          # (tA,) int32
    iota = jax.lax.broadcasted_iota(jnp.int32, (tA, R), 1)
    onehot = (iota == idx[:, None]).astype(jnp.float32)             # (tA, R)
    proj = jnp.dot(onehot, y_ref[...],
                   preferred_element_type=jnp.float32)              # (tA, D) f32

    out_ref[0] = (x_ref[0].astype(jnp.float32) + proj).astype(out_ref.dtype)


def node_to_atom_embedder(x, residue_features, unique_residue_index,
                          not_pad_mask, weight, *, atom_tile=1024):
    """weight: nn.Linear(dim, dim, bias=False).weight, torch layout (out, in)."""
    B, A, D = x.shape
    R = residue_features.shape[1]
    assert weight.shape == (D, D)

    if not (not_pad_mask.dtype == jnp.bool_
            or jnp.issubdtype(not_pad_mask.dtype, jnp.integer)):
        raise ValueError(
            "not_pad_mask must be boolean / {0,1}-valued integer; fractional "
            "masks are not supported by the folded-index gather path.")

    # Fold the pad mask into the index: padded atoms -> -1 -> zero one-hot row
    # (ReLU(0) == 0, so this matches the reference exactly).  The clip matches
    # jnp.take_along_axis clamping for malformed (out-of-range) indices.
    idx = jnp.where(not_pad_mask.astype(bool),
                    jnp.clip(unique_residue_index.astype(jnp.int32), 0, R - 1),
                    -1)

    # Pre-transpose the weight once (tiny one-time D x D copy).
    w_t = weight.T

    # ---- tile-size selection with a generation-aware VMEM budget -----------
    itemsize = jnp.dtype(x.dtype).itemsize
    r_isz = jnp.dtype(residue_features.dtype).itemsize
    w_isz = jnp.dtype(weight.dtype).itemsize

    def vmem_estimate(t):
        return (2 * t * D * itemsize              # x tile, double-buffered
                + 2 * t * D * itemsize            # out tile, double-buffered
                + 2 * R * D * r_isz               # residue block, double-buffered
                + 2 * D * D * w_isz               # weight (default double-buffer)
                + R * D * 4                       # projected-residue scratch (f32)
                + 2 * pl.cdiv(t, 128) * 128 * 4   # idx tile (lane padded)
                + 3 * t * R * 4                   # iota / compare / one-hot temps
                + 2 * t * D * 4)                  # f32 gather + add temporaries

    try:
        vmem_cap = int(pltpu.get_tpu_info().vmem_capacity_bytes)
    except Exception:  # pragma: no cover - conservative fallback (v7x = 64 MiB)
        vmem_cap = 64 * 1024 * 1024
    budget = int(0.8 * vmem_cap)                  # headroom for Mosaic scratch

    if A <= atom_tile:
        tA = A
    else:
        tA = max(8, (atom_tile // 8) * 8)
    while tA > 8 and 2 * vmem_estimate(tA) > budget:
        tA = max(8, ((tA // 2) // 8) * 8)

    vmem_limit = int(max(16 * 1024 * 1024, min(budget, 2 * vmem_estimate(tA))))

    num_atom_tiles = pl.cdiv(A, tA)
    A_pad = num_atom_tiles * tA
    if A_pad != A:
        x_in = jnp.pad(x, ((0, 0), (0, A_pad - A), (0, 0)))
        idx = jnp.pad(idx, ((0, 0), (0, A_pad - A)), constant_values=-1)
    else:
        x_in = x
    # Lane-dense index layout: (B, n_tiles, 1, tA) so the per-tile index DMA
    # fills 128-lane rows instead of a lane-width-1 stream.
    idx4 = idx.reshape(B, num_atom_tiles, 1, tA)

    flops = int(B * (2 * R * D * D                       # per-batch projection
                     + num_atom_tiles * (2 * tA * R * D  # one-hot gather
                                         + tA * D)))     # residual add
    bytes_accessed = int(x_in.size * itemsize            # x in
                         + B * A_pad * D * itemsize      # out
                         + residue_features.size * r_isz
                         + idx4.size * 4
                         + weight.size * w_isz)
    cost = pl.CostEstimate(flops=flops, transcendentals=0,
                           bytes_accessed=bytes_accessed)

    out = pl.pallas_call(
        node_to_atom_kernel,
        out_shape=jax.ShapeDtypeStruct((B, A_pad, D), x.dtype),
        grid_spec=pltpu.PrefetchScalarGridSpec(
            num_scalar_prefetch=0,
            grid=(B, num_atom_tiles),
            in_specs=[
                pl.BlockSpec((1, tA, D), lambda b, a: (b, a, 0)),        # x
                pl.BlockSpec((1, R, D), lambda b, a: (b, 0, 0)),         # residues
                pl.BlockSpec((1, 1, 1, tA), lambda b, a: (b, a, 0, 0)),  # indices
                pl.BlockSpec((D, D), lambda b, a: (0, 0)),               # W.T
            ],
            out_specs=pl.BlockSpec((1, tA, D), lambda b, a: (b, a, 0)),
            scratch_shapes=[pltpu.VMEM((R, D), jnp.float32)],            # Y
        ),
        compiler_params=pltpu.CompilerParams(
            dimension_semantics=("parallel", "arbitrary"),
            vmem_limit_bytes=vmem_limit),
        cost_estimate=cost,
    )(x_in, residue_features, idx4, w_t)

    if A_pad != A:
        out = out[:, :A, :]
    return out


def reference(x, residue_features, unique_residue_index, not_pad_mask, weight):
    gathered = jnp.take_along_axis(
        residue_features, unique_residue_index[..., None], axis=1)
    gathered = gathered * not_pad_mask[..., None].astype(x.dtype)
    proj = jnp.maximum(gathered @ weight.T, 0.0)
    return x + proj


if __name__ == "__main__":
    B, A, R, D = 2, 16, 8, 32  # batch, atoms, residues, dim

    key = jax.random.PRNGKey(0)
    kx, kr, ki, km, kw = jax.random.split(key, 5)

    x = jax.random.normal(kx, (B, A, D), dtype=jnp.float32)
    residue_features = jax.random.normal(kr, (B, R, D), dtype=jnp.float32)
    unique_residue_index = jax.random.randint(ki, (B, A), 0, R, dtype=jnp.int32)
    not_pad_mask = jax.random.uniform(km, (B, A)) > 0.25  # bool

    # Deterministic "nn.Linear(dim, dim, bias=False)" weight (torch layout).
    weight = jax.random.normal(kw, (D, D), dtype=jnp.float32) / jnp.sqrt(D)

    out = node_to_atom_embedder(x, residue_features, unique_residue_index,
                                not_pad_mask, weight)
    out = jax.block_until_ready(out)

    ref = reference(x, residue_features, unique_residue_index,
                    not_pad_mask, weight)
    assert out.shape == (B, A, D)
    assert jnp.allclose(out, ref, atol=1e-5, rtol=1e-5), "mismatch vs reference"

    print("KERNEL_OK")
</pallas_src>

<mosaic_0001>
module attributes {stable_mosaic.version = 11 : i64} {
  func.func @node_to_atom_kernel(%arg0: i32, %arg1: i32, %arg2: memref<1x16x32xf32, #tpu.memory_space<vmem>>, %arg3: memref<1x8x32xf32, #tpu.memory_space<vmem>>, %arg4: memref<1x1x1x16xi32, #tpu.memory_space<vmem>>, %arg5: memref<32x32xf32, #tpu.memory_space<vmem>>, %arg6: memref<1x16x32xf32, #tpu.memory_space<vmem>>, %arg7: memref<8x32xf32, #tpu.memory_space<vmem>>) attributes {dimension_semantics = [#tpu.dimension_semantics<parallel>, #tpu.dimension_semantics<arbitrary>], iteration_bounds = array<i64: 2, 1>, scalar_prefetch = 0 : i64, scratch_operands = 1 : i64, tpu.core_type = #tpu.core_type<tc>, window_params = [{transform_indices = @transform_0, window_bounds = array<i64: 1, 16, 32>}, {transform_indices = @transform_1, window_bounds = array<i64: 1, 8, 32>}, {transform_indices = @transform_2, window_bounds = array<i64: 1, 1, 1, 16>}, {pipeline_mode = #tpu.pipeline_mode<synchronous>, transform_indices = @transform_3, window_bounds = array<i64: 32, 32>}, {transform_indices = @transform_4, window_bounds = array<i64: 1, 16, 32>}]} {
    %c0_i32 = arith.constant 0 : i32
    %0 = arith.cmpi eq, %arg1, %c0_i32 : i32
    %1 = arith.extui %0 : i1 to i32
    %c0_i32_0 = arith.constant 0 : i32
    %2 = arith.cmpi ne, %1, %c0_i32_0 : i32
    scf.if %2 {
      %c0_12 = arith.constant 0 : index
      %c0_13 = arith.constant 0 : index
      %c0_14 = arith.constant 0 : index
      %19 = vector.load %arg3[%c0_12, %c0_13, %c0_14] : memref<1x8x32xf32, #tpu.memory_space<vmem>>, vector<1x8x32xf32>
      %20 = vector.shape_cast %19 : vector<1x8x32xf32> to vector<8x32xf32>
      %c0_15 = arith.constant 0 : index
      %c0_16 = arith.constant 0 : index
      %21 = vector.load %arg5[%c0_15, %c0_16] : memref<32x32xf32, #tpu.memory_space<vmem>>, vector<32x32xf32>
      %cst_17 = arith.constant dense<0.000000e+00> : vector<8x32xf32>
      %22 = tpu.matmul %20, %21, %cst_17 {dimension_numbers = #tpu.dot_dimension_numbers<[1], [0], [0], [1], [0, 0, 1, 1], [], []>} : vector<8x32xf32>, vector<32x32xf32>, vector<8x32xf32> -> vector<8x32xf32>
      %cst_18 = arith.constant 0.000000e+00 : f32
      %23 = vector.broadcast %cst_18 : f32 to vector<8x32xf32>
      %24 = arith.maximumf %22, %23 : vector<8x32xf32>
      %c0_19 = arith.constant 0 : index
      %c0_20 = arith.constant 0 : index
      %25 = vector.load %arg7[%c0_19, %c0_20] : memref<8x32xf32, #tpu.memory_space<vmem>>, vector<8x32xf32>
      tpu.vector_store %arg7[%c0_19, %c0_20], %24 {strides = array<i32>} : memref<8x32xf32, #tpu.memory_space<vmem>>, vector<8x32xf32>,
    } else {
    }
    %c0 = arith.constant 0 : index
    %c0_1 = arith.constant 0 : index
    %c0_2 = arith.constant 0 : index
    %c0_3 = arith.constant 0 : index
    %3 = vector.load %arg4[%c0, %c0_1, %c0_2, %c0_3] : memref<1x1x1x16xi32, #tpu.memory_space<vmem>>, vector<1x1x1x16xi32>
    %4 = vector.shape_cast %3 : vector<1x1x1x16xi32> to vector<16xi32>
    %5 = tpu.iota {dimensions = array<i32: 1>} : vector<16x8xi32>
    %6 = vector.shape_cast %4 : vector<16xi32> to vector<16x1xi32>
    %7 = vector.broadcast %6 : vector<16x1xi32> to vector<16x8xi32>
    %8 = arith.cmpi eq, %5, %7 : vector<16x8xi32>
    %9 = arith.extui %8 : vector<16x8xi1> to vector<16x8xi32>
    %10 = arith.sitofp %9 : vector<16x8xi32> to vector<16x8xf32>
    %c0_4 = arith.constant 0 : index
    %c0_5 = arith.constant 0 : index
    %11 = vector.load %arg7[%c0_4, %c0_5] : memref<8x32xf32, #tpu.memory_space<vmem>>, vector<8x32xf32>
    %cst = arith.constant dense<0.000000e+00> : vector<16x32xf32>
    %12 = tpu.matmul %10, %11, %cst {dimension_numbers = #tpu.dot_dimension_numbers<[1], [0], [0], [1], [0, 0, 1, 1], [], []>} : vector<16x8xf32>, vector<8x32xf32>, vector<16x32xf32> -> vector<16x32xf32>
    %c0_6 = arith.constant 0 : index
    %c0_7 = arith.constant 0 : index
    %c0_8 = arith.constant 0 : index
    %13 = vector.load %arg2[%c0_6, %c0_7, %c0_8] : memref<1x16x32xf32, #tpu.memory_space<vmem>>, vector<1x16x32xf32>
    %14 = vector.shape_cast %13 : vector<1x16x32xf32> to vector<16x32xf32>
    %15 = arith.addf %14, %12 : vector<16x32xf32>
    %c0_9 = arith.constant 0 : index
    %c0_10 = arith.constant 0 : index
    %c0_11 = arith.constant 0 : index
    %16 = vector.load %arg6[%c0_9, %c0_10, %c0_11] : memref<1x16x32xf32, #tpu.memory_space<vmem>>, vector<1x16x32xf32>
    %17 = vector.shape_cast %16 : vector<1x16x32xf32> to vector<16x32xf32>
    %18 = vector.shape_cast %15 : vector<16x32xf32> to vector<1x16x32xf32>
    tpu.vector_store %arg6[%c0_9, %c0_10, %c0_11], %18 {strides = array<i32>} : memref<1x16x32xf32, #tpu.memory_space<vmem>>, vector<1x16x32xf32>,
    return
  }
  func.func @transform_0(%arg0: i32, %arg1: i32) -> (i32, i32, i32) {
    %c0_i32 = arith.constant 0 : i32
    %c0_i32_0 = arith.constant 0 : i32
    return %arg0, %arg1, %c0_i32 : i32, i32, i32
  }
  func.func @transform_1(%arg0: i32, %arg1: i32) -> (i32, i32, i32) {
    %c0_i32 = arith.constant 0 : i32
    %c0_i32_0 = arith.constant 0 : i32
    %c0_i32_1 = arith.constant 0 : i32
    return %arg0, %c0_i32, %c0_i32_0 : i32, i32, i32
  }
  func.func @transform_2(%arg0: i32, %arg1: i32) -> (i32, i32, i32, i32) {
    %c0_i32 = arith.constant 0 : i32
    %c0_i32_0 = arith.constant 0 : i32
    %c0_i32_1 = arith.constant 0 : i32
    return %arg0, %arg1, %c0_i32, %c0_i32_0 : i32, i32, i32, i32
  }
  func.func @transform_3(%arg0: i32, %arg1: i32) -> (i32, i32) {
    %c0_i32 = arith.constant 0 : i32
    %c0_i32_0 = arith.constant 0 : i32
    %c0_i32_1 = arith.constant 0 : i32
    return %c0_i32, %c0_i32_0 : i32, i32
  }
  func.func @transform_4(%arg0: i32, %arg1: i32) -> (i32, i32, i32) {
    %c0_i32 = arith.constant 0 : i32
    %c0_i32_0 = arith.constant 0 : i32
    return %arg0, %arg1, %c0_i32 : i32, i32, i32
  }
}

</mosaic_0001>

<bundles_post_ra>
// kernel: tpu_custom_call.1
= control target key start
LH: loop header
LB: loop body
LE: loop exit
PB: predicated region body
PF: predicated region fallthrough
CT: control target
= control target key end

     0   :  { %s1133_s0 = inlined_call_operand.hbm [shape: f32[2,16,32], index: 0, kind: input, shape index: {}]   ;;  %s1134_s1 = inlined_call_operand.hbm [shape: f32[2,8,32], index: 1, kind: input, shape index: {}]   ;;  %s1135_s2 = inlined_call_operand.hbm [shape: s32[2,1,1,16], index: 2, kind: input, shape index: {}]   ;;  %s1136_s3 = inlined_call_operand.hbm [shape: f32[32,32], index: 3, kind: input, shape index: {}]   ;;  %s1137_s4 = inlined_call_operand.hbm [shape: f32[2,16,32], index: 4, kind: output, shape index: {}]  }
   0x1   :  { %1146 = sst [smem:[#allocation23_spill]] %s1134_s1 }
   0x2   :  { %1147 = sst [smem:[#allocation24_spill]] %s1136_s3 }
   0x3   :  { %9 = vsyncpa [#allocation4], 0 }
   0x4   :  { %11 = vsyncpa [#allocation4 + $0x1], 0 }
   0x5   :  { %12 = vsyncpa [#allocation7], 0 }
   0x6   :  { %14 = vsyncpa [#allocation7 + $0x1], 0 }
   0x7   :  { %15 = vsyncpa [#allocation10], 0 }
   0x8   :  { %16 = vsyncpa [#allocation5], 0 }
   0x9   :  { %18 = vsyncpa [#allocation5 + $0x1], 0  ;;  %s942_s15 = smov 0   ;;  %s944_s16 = smov 0  }
   0xa   :  { %s946_s17 = smov 0   ;;  %s948_s18 = smov 0  }
   0xb   :  { %s950_s19 = smov 0   ;;  %s952_s20 = smov 0  }
   0xc LB: > { %1148 = sst [smem:[#allocation16_spill]] %s889_s15  ;;  %s973_s21 = sadd.s32 4294967295, %s909_s20   ;;  %s909_s20 = sphi %s952_s20, %s24_s20   ;;  %s905_s19 = sphi %s950_s19, %s1172_s19   ;;  %s901_s18 = sphi %s948_s18, %s1171_s18   ;;  %s897_s17 = sphi %s946_s17, %s1167_s17   ;;  %s893_s16 = sphi %s944_s16, %s1170_s16   ;;  %s889_s15 = sphi %s942_s15, %s1169_s15  }
   0xd   : > { %1149 = sst [smem:[#allocation17_spill]] %s897_s17  ;;  %s580_s22 = sadd.s32 4294967294, %s909_s20  }
   0xe   : > { %1150 = sst [smem:[#allocation18_spill]] %s909_s20  ;;  %s36_s23 = sadd.s32 1, %s905_s19 }
   0xf   : > { %s45_s24 = sadd.s32 1, %s897_s17  ;;  %p38_p0 = scmp.ge.s32.totalorder %s36_s23, 2 }
  0x10   : > { %p52_p1 = scmp.ne.s32.totalorder %s897_s17, %s893_s16  ;;  %p53_p2 = scmp.eq.s32.totalorder %s909_s20, 0 }
  0x11   : > { %p58_p3 = scmp.ne.s32.totalorder %s893_s16, %s889_s15  ;;  %s1174_s23 = smov (%p38_p0, %s36_s23), 0 }
  0x12   : > { %1151 = sst [smem:[#allocation19_spill]] %s1174_s23  ;;  %p54_p4 = por %p53_p2, %p52_p1 }
  0x13   : > { %p159_p5 = scmp.eq.s32.totalorder %s973_s21, 1  ;;  %s40_s25 = ssub.s32 %s905_s19, %s1174_s23 }
  0x14   : > { %p165_p6 = scmp.eq.s32.totalorder %s580_s22, 1  ;;  %p43_p7 = scmp.eq.s32.totalorder %s40_s25, 0 }
  0x15   : > { %p988_p8 = por %p159_p5, %p52_p1  ;;  %p583_p10 = scmp.ge.s32.totalorder %s909_s20, 2 }
  0x16   : > { %p995_p9 = por %p165_p6, %p58_p3  ;;  %p638_p11 = scmp.lt.s32.totalorder %s909_s20, 2 }
  0x17   : > { %s1152_s26 = scalar_select %p988_p8, 1, 0 }
  0x18   : > { %s1154_s27 = scalar_select %p995_p9, 1, 0 }
  0x19   : > { %1153 = sst [smem:[#allocation20_spill]] %s1152_s26  ;;  %s1005_s29 = sand.u32 1, %s897_s17  }
  0x1a   : > { %1155 = sst [smem:[#allocation21_spill]] %s1154_s27  ;;  %s223_s30 = sand.u32 1, %s909_s20  }
  0x1b   : > { %s1000_s28 = scalar_select %p43_p7, %s897_s17, %s45_s24  }
  0x1c   : > { %p1008_p12 = pnand %p638_p11, %p54_p4  ;;  %s587_s6 = sshll.u32 %s1005_s29, 3 }
  0x1d   : > { %1156 = sst [smem:[#allocation22_spill]] %s1000_s28  ;;  %s588_s7 = sshll.u32 %s905_s19, 3 }
  0x1e   : > { %s1158_s1 = sld [smem:[#allocation23_spill]]  ;;  %s227_s11 = scalar_lea.vmem [#allocation6], %s587_s6 }
  0x1f   : > { %s235_s12 = sshll.u32 %s227_s11, 4  ;;  %s1017_s14 = scalar_lea.sflag [#allocation7], %s223_s30  ;;  %s236_s12 = int_to_ptr.vmem [resolvable:$true] %s235_s12 }
  0x20   : > { %p59_p13 = scmp.eq.s32.totalorder %s973_s21, 0  ;;  %p581_p0 = scmp.ge.s32.totalorder %s909_s20, 1 }
  0x21   : > { %p172_p1 = scmp.lt.s32.totalorder %s909_s20, 3  ;;  %s1160_s3 = sld [smem:[#allocation24_spill]] }
  0x22   : > { %p1030_p2 = por %p59_p13, %p58_p3  ;;  %s911_s30 = smov [#allocation9]  }
  0x23   : > { %p1037_p4 = pnand %p581_p0, %p172_p1  ;;  %s185_s8 = sshll.u32 %s911_s30, 4  ;;  %s186_s8 = int_to_ptr.vmem [resolvable:$true] %s185_s8 }
  0x24   : > { %s231_s10 = scalar_lea.hbm %s1158_s1, %s588_s7  ;;  %s584_s9 = sshll.u32 %s1005_s29, 4 }
  0x25   : > { %s233_s13 = sshll.u32 %s231_s10, 4  ;;  %p619_p5 = pneg %p1037_p4  ;;  %s234_s13 = int_to_ptr.hbm [resolvable:$true] %s233_s13 }
  0x26   : > { %629 = dma.hbm_to_vmem [thread:$0]  (!%p1008_p12), %s234_s13, 128, %s236_s12, %s1017_s14  }
  0x27   : > { %s183_s6 = sshll.u32 %s1160_s3, 4  ;;  %p620_p3 = pnand %p619_p5, %p59_p13  ;;  %s184_s6 = int_to_ptr.hbm [resolvable:$true] %s183_s6 }
  0x28   : > { %s604_s10 = sshll.u32 %s905_s19, 4  ;;  %s912_s11 = smov 128  }
  0x29   : > { %s913_s12 = smov 8   ;;  %s210_s25 = scalar_lea.hbm %s1133_s0, %s604_s10 }
  0x2a   : > { %622 = dma.hbm_to_vmem [thread:$0]  (!%p620_p3), %s184_s6, 512, %s186_s8, [#allocation10], %s912_s11, %s912_s11, %s913_s12  }
  0x2b   : > { %s203_s1 = scalar_lea.vmem [#allocation3], %s584_s9  ;;  %s211_s23 = sshll.u32 %s210_s25, 4  ;;  %s212_s23 = int_to_ptr.hbm [resolvable:$true] %s211_s23 }
  0x2c   : > { %s213_s3 = sshll.u32 %s203_s1, 4  ;;  %s200_s30 = scalar_lea.sflag [#allocation4], %s1005_s29  ;;  %s214_s3 = int_to_ptr.vmem [resolvable:$true] %s213_s3 }
  0x2d   : > { %626 = dma.hbm_to_vmem [thread:$0]  (!%p1008_p12), %s212_s23, 256, %s214_s3, %s200_s30, %s912_s11, %s912_s11, %s913_s12  }
  0x2e   : > { %s249_s20 = scalar_lea.hbm %s1135_s2, %s905_s19  ;;  %s245_s27 = scalar_lea.vmem [#allocation8], %s1005_s29 }
  0x2f   : > { %s253_s15 = sshll.u32 %s245_s27, 4  ;;  %s251_s26 = sshll.u32 %s249_s20, 4  ;;  %s254_s15 = int_to_ptr.vmem [resolvable:$true] %s253_s15  ;;  %s252_s26 = int_to_ptr.hbm [resolvable:$true] %s251_s26 }
  0x30   : > { %632 = dma.hbm_to_vmem [thread:$0]  (!%p1008_p12), %s252_s26, 16, %s254_s15, %s1017_s14  }
  0x31   : > { %262 = sbr.rel (%p1037_p4) target bundleno = 343 (0x157), region = 36  ;;  %s1064_s1 = sand.u32 (!%p1037_p4), 1, %s893_s16  }
  0x32   : > { %s590_s3 = sshll.u32 (!%p1037_p4), %s1064_s1, 4  ;;  %s265_s17 = scalar_lea.sflag (!%p1037_p4), [#allocation4], %s1064_s1 }
  0x33   : > { %s1070_s23 = scalar_lea.vmem (!%p1037_p4), [#allocation3], %s590_s3 }
  0x36   : > { %872 = dma.done.wait (%p1030_p2), %s265_s17, 256  }
  0x37   : > { %874 = vsyncadd (%p1030_p2), %s265_s17, 4294967040  ;;  %s274_s15 = sand.u32 1, %s973_s21   ;;  %s591_s20 = sshll.u32 %s1064_s1, 3 }
  0x38   : > { %s275_s26 = scalar_lea.sflag [#allocation7], %s274_s15  ;;  %s278_s27 = scalar_lea.vmem [#allocation6], %s591_s20 }
  0x39   : > { %876 = dma.done.wait (%p1030_p2), %s275_s26, 144  }
  0x3a   : > { %878 = vsyncadd (%p1030_p2), %s275_s26, 4294967152  ;;  %s287_s28 = scalar_lea.vmem [#allocation8], %s1064_s1 }
  0x3b   : > { %880 = dma.done.wait (%p59_p13), [#allocation10], 512  }
  0x3c   : > { %882 = vsyncadd (%p59_p13), [#allocation10], 4294966784  ;;  %v365_v0 = vlaneseq  ;;  %v337_v3 = vld [vmem:[#allocation9 + $0x18] sm:$0xff]  ;;  %v336_v4 = vld [vmem:[#allocation9 + $0x10] sm:$0xff]  ;;  %vm338_vm0 = vcmask 261120   ;;  %vm387_vm3 = vcmask 64512  }
  0x3d   : > { %354 = vmatpush.msra.mxu0 %v337_v3  ;;  %v335_v5 = vld [vmem:[#allocation9 + $0x8] sm:$0xff]  ;;  %v698_v6 = vld [vmem:[%s287_s28] ss:$0 sm:$0xff]  ;;  %v914_v14 = vmov 0.0   ;;  %s605_s21 = sshll.u32 %s901_s18, 4  ;;  %s326_s6 = scalar_lea.vmem [#allocation11], %s590_s3 }
  0x3e   : > { %v369_v1 = vshrl.u32 %v365_v0, 7  ;;  %v334_v7 = vld [vmem:[#allocation9] sm:$0xff]  ;;  %v333_v8 = vld [vmem:[%s278_s27] sm:$0xff]  ;;  %v366_v12 = vand.u32 127, %v365_v0  ;;  %s438_s14 = scalar_lea.hbm %s1137_s4, %s605_s21  ;;  %s439_s7 = sshll.u32 %s326_s6, 4  ;;  %s440_s7 = int_to_ptr.vmem [resolvable:$true] %s439_s7 }
  0x3f   : > { %355 = vmatpush.msra.mxu0 %v336_v4  ;;  %v417_v18 = vld [vmem:[%s1070_s23] sm:$0xff]  ;;  %s441_s8 = sshll.u32 %s438_s14, 4  ;;  %v418_v21 = vld [vmem:[%s1070_s23 + $0x8] sm:$0xff]  ;;  %s425_s18 = scalar_lea.sflag [#allocation5], %s1064_s1  ;;  %s442_s8 = int_to_ptr.hbm [resolvable:$true] %s441_s8 }
  0x40   : > { %v376_v2 = vadd.s32 8, %v369_v1  ;;  %s833_s9 = sshra.s32 %s442_s8, 4  ;;  %s839_s13 = scalar_lea.hbm %s1137_s4, 32  ;;  %s834_s9 = int_to_ptr.hbm [resolvable:$true] %s833_s9 }
  0x41   : > { %356 = vmatpush.msra.mxu0 %v335_v5  ;;  %s835_s10 = scalar_lea.hbm %s834_s9, 16  ;;  %p840_p12 = scmp.lt.s32.totalorder %s834_s9, %s1137_s4 }
  0x42   : > { %695 = vset.pattern.permute.xlu0 %v376_v2  ;;  %p836_p6 = scmp.ne.s32.totalorder %s834_s9, %s835_s10  ;;  %p841_p13 = scmp.lt.s32.totalorder %s839_s13, %s835_s10 }
  0x43   : > { %357 = vmatpush.msra.mxu0 %v334_v7 }
  0x44   : > { %594 = vmatmul.msk.f32.vlgmr.msra.gmra.mxu0 %vm338_vm0, %v333_v8  ;;  %p837_p7 = pnand %p836_p6, %p988_p8  ;;  %p842_p0 = por %p841_p13, %p840_p12 }
  0x46   : > { %p838_p11 = pneg %p837_p7 }
  0x48   : > { %p843_p1 = pnand %p842_p0, %p838_p11 }
  0x4a   : > { %378 = vperm.xlu0 %695, %v698_v6  }
  0x52   : > { %696 = vset.pattern.permute.xlu0 %v369_v1 }
  0x5a   : > { %372 = vperm.xlu0 %696, %v698_v6  }
  0x62   : > { %697 = vset.pattern.permute.xlu0 %v376_v2 }
  0xbc   : > { %v379_v9 = vpop.permute.xlu0 %378 }
  0xbd   : > { %vm381_vm2 = vcmp.eq.s32.totalorder %v366_v12, %v379_v9 }
  0xbe   : > { %v596_v17 = vsel %vm381_vm2, 1.0, %v914_v14 }
  0xc1   : > { %v359_v10 = vpop.f32.mrf.mxu0 }
  0xc2   : > { %v362_v11 = vmax.f32 %v359_v10, 0.0 }
  0xc4   : > { %363 = vst.msk [vmem:[#allocation2] sm:$0xff] %vm338_vm0, %v362_v11 }
  0xcb   : > { %v386_v16 = vld [vmem:[#allocation2] sm:$0xff] }
  0xcc   : > { %v373_v13 = vpop.permute.xlu0 %372  ;;  %409 = vmatpush.msra.mxu1 %v386_v16  ;;  %606 = vmatpush.msra.mxu2 %v386_v16 }
  0xcd   : > { %vm380_vm1 = vcmp.eq.s32.totalorder %v366_v12, %v373_v13  ;;  %598 = vmatmul.msk.f32.vlgmr.msra.gmra.mxu2 %vm387_vm3, %v596_v17 }
  0xce   : > { %v595_v15 = vsel %vm380_vm1, 1.0, %v914_v14 }
  0xcf   : > { %597 = vmatmul.msk.f32.vlgmr.msra.gmra.mxu1 %vm387_vm3, %v595_v15 }
 0x14c   : > { %v411_v19 = vpop.f32.mrf.mxu1 }
 0x14d   : > { %v419_v20 = vadd.f32 %v417_v18, %v411_v19 }
 0x14f   : > { %422 = vst.msk [vmem:[%s326_s6] sm:$0xff] %vm338_vm0, %v419_v20 }
 0x150   : > { %v414_v22 = vpop.f32.mrf.mxu2 }
 0x151   : > { %v420_v23 = vadd.f32 %v418_v21, %v414_v22 }
 0x153   : > { %423 = vst.msk [vmem:[%s326_s6 + $0x8] sm:$0xff] %vm338_vm0, %v420_v23 }
 0x154   : > { %846 = shalt.err (!%p843_p1)
}
 0x155   : > { %s915_s30 = smov 128   ;;  %s916_s1 = smov 8  }
 0x156   : > { %617 = dma.vmem_to_hbm [thread:$0]  (%p988_p8), %s440_s7, 256, %s442_s8, %s425_s18, %s915_s30, %s915_s30, %s916_s1  }
 0x157 PF: > { %s1163_s3 = sld [smem:[#allocation16_spill]]  ;;  %p634_p2 = pnand %p583_p10, %p995_p9 }
 0x158   : > { %s1165_s23 = sld [smem:[#allocation18_spill]] }
 0x159   : > { %p635_p4 = pneg %p634_p2 }
 0x15d   : > { %s456_s15 = sand.u32 1, %s1163_s3  }
 0x15e   : > { %s457_s20 = scalar_lea.sflag [#allocation5], %s456_s15 }
 0x15f   : > { %884 = dma.done.wait (%p635_p4), %s457_s20, 256  }
 0x160   : > { %886 = vsyncadd (%p635_p4), %s457_s20, 4294967040  ;;  %s24_s20 = sadd.s32 1, %s1165_s23   ;;  %s1166_s26 = sld [smem:[#allocation17_spill]] }
 0x161   : > { %p21_p5 = scmp.ge.s32.totalorder %s24_s20, 4   ;;  %s1167_s17 = sld [smem:[#allocation22_spill]] }
 0x162   : > { %s1168_s27 = sld [smem:[#allocation19_spill]]  ;;  %s1169_s15 = smov %s893_s16 }
 0x163   : > { %s1171_s18 = smov %s905_s19 }
 0x164   :  { %23 = sbr.rel (!%p21_p5) target bundleno = 12 (0xc), region = 113 }
 0x166   : > { %s1170_s16 = smov %s1166_s26 }
 0x168   : > { %s1172_s19 = smov %s1168_s27 }
 0x169   :  { %463 = vsyncpa [#allocation4], 1 }
 0x16a   :  { %465 = vsyncpa [#allocation4 + $0x1], 1 }
 0x16b   :  { %466 = vsyncpa [#allocation7], 1 }
 0x16c   :  { %468 = vsyncpa [#allocation7 + $0x1], 1 }
 0x16d   :  { %469 = vsyncpa [#allocation10], 1 }
 0x16e   :  { %470 = vsyncpa [#allocation5], 1 }
 0x16f   :  { %472 = vsyncpa [#allocation5 + $0x1], 1 }

</bundles_post_ra>
